<compile_context>
chip_gen: v6e
topology: v6e:2x2x1
jax: 0.10.0
libtpu: 0.0.40
codegen_flags: <defaults>
</compile_context>

<pallas_src>
import jax
import jax.numpy as jnp
from jax.experimental import pallas as pl
from jax.experimental.pallas import tpu as pltpu

_VMEM_LIMIT_BYTES = 48 * 1024 * 1024  # > v5e(16)/v6e,v7x(32) MiB scoped defaults, < v7x 64 MiB physical


def _group_max_kernel(x_ref, o_ref):
    # x_ref: (TB, G, HW_TILE); o_ref: (TB, HW_TILE).
    # Reduce over the G axis only (always a full block dim), so trailing-block
    # padding on the NC or HW axes never enters the max and is masked on writeback.
    o_ref[...] = jnp.max(x_ref[...], axis=1)


def _target_block_bytes() -> int:
    """Per-buffer input-block budget (Pallas double-buffers it)."""
    try:
        vmem = pltpu.get_tpu_info().vmem_capacity_bytes
    except Exception:
        vmem = 64 * 1024 * 1024
    if vmem >= 96 * 1024 * 1024:
        return 16 * 1024 * 1024   # v5e / v6e: 128 MiB VMEM -> 2x16 MiB input + output fits easily
    return 8 * 1024 * 1024        # v7x: 64 MiB VMEM -> 2x8 MiB input + output well under 48 MiB scope


def _num_tensorcores() -> int:
    """2 TensorCores per chip only on v7x; v5e/v6e are single-core."""
    try:
        kind = jax.devices()[0].device_kind.lower()
    except Exception:
        return 1
    return 2 if "v7" in kind else 1


def _choose_tiles(nc: int, g: int, hw: int, itemsize: int, target_bytes: int, num_tc: int):
    """Pick (tb, hw_tile): rows of the NC axis and lanes of the HW axis per grid step."""
    sub = max(8, 32 // max(itemsize, 1))      # dtype sublane packing: 8 f32 / 16 bf16 / 32 int8
    tb_min = nc if nc <= sub else sub

    # Very large G*HW rows: tile the lane (HW) axis in multiples of 128 so the block
    # stays within budget (and within VMEM) instead of failing to compile.
    if tb_min * g * hw * itemsize > target_bytes and hw > 128:
        hw_tile = (target_bytes // (tb_min * g * itemsize)) // 128 * 128
        hw_tile = int(min(max(hw_tile, 128), hw))
        if hw_tile < hw:
            return tb_min, hw_tile
    hw_tile = hw

    if nc <= sub:
        return nc, hw_tile                    # single full block on the NC axis (== array dim)

    row_bytes = g * hw_tile * itemsize
    tb = max(sub, (target_bytes // max(row_bytes, 1)) // sub * sub)

    # v7x only: keep work for both TensorCores and prefer a core-balanced step count.
    if num_tc >= 2:
        cap = (pl.cdiv(nc, num_tc) // sub) * sub
        if cap >= sub:
            tb = min(tb, cap)
        steps = pl.cdiv(nc, tb)
        if steps % num_tc:
            want = ((steps + num_tc - 1) // num_tc) * num_tc
            tb_bal = ((pl.cdiv(nc, want) + sub - 1) // sub) * sub
            if sub <= tb_bal <= tb and pl.cdiv(nc, tb_bal) % num_tc == 0:
                tb = tb_bal

    if tb >= nc:
        tb = nc                               # single block == full array dim (layout-legal)
    return tb, hw_tile


def group_max_pooling(x: jax.Array, *, target_block_bytes: int | None = None) -> jax.Array:
    """Equivalent of torch.max(x, dim=2)[0] for x of shape (N, C, G, H, W)."""
    N, C, G, H, W = x.shape
    NC, HW = N * C, H * W
    itemsize = jnp.dtype(x.dtype).itemsize
    target = _target_block_bytes() if target_block_bytes is None else target_block_bytes
    tb, hw_tile = _choose_tiles(NC, G, HW, itemsize, target, _num_tensorcores())

    x_view = x.reshape(NC, G, HW)             # flattened spec is legal for any HW
    grid = (pl.cdiv(NC, tb), pl.cdiv(HW, hw_tile))

    out = pl.pallas_call(
        _group_max_kernel,
        out_shape=jax.ShapeDtypeStruct((NC, HW), x.dtype),
        grid_spec=pltpu.PrefetchScalarGridSpec(
            num_scalar_prefetch=0,
            grid=grid,
            in_specs=[pl.BlockSpec((tb, G, hw_tile), lambda i, j: (i, 0, j))],
            out_specs=pl.BlockSpec((tb, hw_tile), lambda i, j: (i, j)),
        ),
        compiler_params=pltpu.CompilerParams(
            dimension_semantics=("parallel", "parallel"),
            vmem_limit_bytes=_VMEM_LIMIT_BYTES,
        ),
        cost_estimate=pl.CostEstimate(
            flops=NC * max(G - 1, 0) * HW,
            transcendentals=0,
            bytes_accessed=(NC * G * HW + NC * HW) * itemsize,
        ),
    )(x_view)

    return out.reshape(N, C, H, W)


if __name__ == "__main__":
    key = jax.random.PRNGKey(0)
    k1, k2, k3, k4 = jax.random.split(key, 4)

    # Primary case (module layout): (batch=2, channels=4, group=8, H=16, W=16).
    x = jax.random.normal(key, (2, 4, 8, 16, 16), dtype=jnp.float32)
    y = jax.block_until_ready(group_max_pooling(x))
    y_ref = jnp.max(x, axis=2)
    assert y.shape == y_ref.shape == (2, 4, 16, 16)
    assert jnp.allclose(y, y_ref), "mismatch vs reference (primary)"

    # Multi-step NC blocking with a padded trailing block (NC=20, tb=8 via small budget).
    x2 = jax.random.normal(k1, (4, 5, 8, 16, 16), dtype=jnp.float32)
    y2 = jax.block_until_ready(group_max_pooling(x2, target_block_bytes=64 * 1024))
    assert jnp.allclose(y2, jnp.max(x2, axis=2)), "mismatch vs reference (NC-blocked)"

    # Non-128-multiple spatial size uses the same flattened spec (no 4D fallback).
    x3 = jax.random.normal(k2, (2, 3, 5, 7, 7), dtype=jnp.float32)
    y3 = jax.block_until_ready(group_max_pooling(x3))
    assert jnp.allclose(y3, jnp.max(x3, axis=2)), "mismatch vs reference (odd HW)"

    # HW (lane) tiling path with a padded trailing lane block (HW=320, hw_tile=128).
    x4 = jax.random.normal(k3, (2, 2, 4, 8, 40), dtype=jnp.float32)
    y4 = jax.block_until_ready(group_max_pooling(x4, target_block_bytes=8 * 1024))
    assert jnp.allclose(y4, jnp.max(x4, axis=2)), "mismatch vs reference (HW-tiled)"

    # Packed-dtype path (bf16 -> 16-row sublane packing).
    x5 = jax.random.normal(k4, (2, 4, 8, 16, 16), dtype=jnp.bfloat16)
    y5 = jax.block_until_ready(group_max_pooling(x5))
    assert jnp.allclose(y5, jnp.max(x5, axis=2)), "mismatch vs reference (bf16)"

    print("KERNEL_OK")
</pallas_src>

<mosaic_0001>
module attributes {stable_mosaic.version = 11 : i64} {
  func.func @_group_max_kernel(%arg0: i32, %arg1: i32, %arg2: memref<8x8x256xf32, #tpu.memory_space<vmem>>, %arg3: memref<8x256xf32, #tpu.memory_space<vmem>>) attributes {dimension_semantics = [#tpu.dimension_semantics<parallel>, #tpu.dimension_semantics<parallel>], iteration_bounds = array<i64: 1, 1>, scalar_prefetch = 0 : i64, scratch_operands = 0 : i64, tpu.core_type = #tpu.core_type<tc>, window_params = [{transform_indices = @transform_0, window_bounds = array<i64: 8, 8, 256>}, {transform_indices = @transform_1, window_bounds = array<i64: 8, 256>}]} {
    %c0 = arith.constant 0 : index
    %c0_0 = arith.constant 0 : index
    %c0_1 = arith.constant 0 : index
    %0 = vector.load %arg2[%c0, %c0_0, %c0_1] : memref<8x8x256xf32, #tpu.memory_space<vmem>>, vector<8x8x256xf32>
    %cst = arith.constant dense<0xFF800000> : vector<8x256xf32>
    %1 = vector.multi_reduction <maximumf>, %0, %cst [1] : vector<8x8x256xf32> to vector<8x256xf32>
    %c0_2 = arith.constant 0 : index
    %c0_3 = arith.constant 0 : index
    %2 = vector.load %arg3[%c0_2, %c0_3] : memref<8x256xf32, #tpu.memory_space<vmem>>, vector<8x256xf32>
    tpu.vector_store %arg3[%c0_2, %c0_3], %1 {strides = array<i32>} : memref<8x256xf32, #tpu.memory_space<vmem>>, vector<8x256xf32>,
    return
  }
  func.func @transform_0(%arg0: i32, %arg1: i32) -> (i32, i32, i32) {
    %c0_i32 = arith.constant 0 : i32
    %c0_i32_0 = arith.constant 0 : i32
    return %arg0, %c0_i32, %arg1 : i32, i32, i32
  }
  func.func @transform_1(%arg0: i32, %arg1: i32) -> (i32, i32) {
    %c0_i32 = arith.constant 0 : i32
    return %arg0, %arg1 : i32, i32
  }
}

</mosaic_0001>

<bundles_post_ra>
// kernel: tpu_custom_call.1
= control target key start
LH: loop header
LB: loop body
LE: loop exit
PB: predicated region body
PF: predicated region fallthrough
CT: control target
= control target key end

     0   :  { %6 = vsyncpa [#allocation3], 0  ;;  %s273_s0 = inlined_call_operand.hbm [shape: f32[8,8,256], index: 0, kind: input, shape index: {}]   ;;  %s274_s1 = inlined_call_operand.hbm [shape: f32[8,256], index: 1, kind: output, shape index: {}]  }
   0x1   :  { %7 = vsyncpa [#allocation4], 0  ;;  %s239_s6 = smov [#allocation2]  }
   0x2   :  { %s13_s7 = sshll.u32 %s239_s6, 4  ;;  %s14_s7 = int_to_ptr.vmem [resolvable:$true] %s13_s7 }
   0x3   :  { %s203_s8 = scalar_lea.vmem %s14_s7, 2048  ;;  %p208_p1 = scmp.lt.s32.totalorder %s14_s7, %s14_s7 }
   0x4   :  { %p204_p0 = scmp.ne.s32.totalorder %s14_s7, %s203_s8  ;;  %p209_p2 = scmp.lt.s32.totalorder %s203_s8, %s203_s8 }
   0x6   :  { %p210_p3 = por %p209_p2, %p208_p1 }
   0x8   :  { %p211_p4 = pnand %p210_p3, %p204_p0 }
   0xa   :  { %214 = shalt.err (!%p211_p4)
}
   0xb   :  { %s240_s9 = smov 256   ;;  %s241_s10 = smov 16  }
   0xc   :  { %19 = dma.hbm_to_vmem [thread:$0]  %s273_s0, 2048, %s14_s7, [#allocation3], %s240_s9, %s240_s9, %s241_s10  }
   0xd   :  { %235 = dma.done.wait [#allocation3], 2048  }
   0xe   :  { %236 = vsyncadd [#allocation3], 4294965248  ;;  %v23_v0 = vld [vmem:[#allocation2] sm:$0xff]  ;;  %v25_v1 = vld [vmem:[#allocation2 + $0x10] sm:$0xff]  ;;  %vm151_vm0 = vcmask 1041409   ;;  %vm153_vm1 = vcmask 1042434  }
   0xf   :  { %v27_v2 = vld [vmem:[#allocation2 + $0x20] sm:$0xff]  ;;  %v29_v3 = vld [vmem:[#allocation2 + $0x30] sm:$0xff]  ;;  %v39_v6 = vrot.slane %v23_v0, 4  ;;  %v51_v7 = vrot.slane %v25_v1, 4  ;;  %vm155_vm2 = vcmask 1043459   ;;  %vm157_vm3 = vcmask 1044484  }
  0x10   :  { %v31_v4 = vld [vmem:[#allocation2 + $0x40] sm:$0xff]  ;;  %v33_v5 = vld [vmem:[#allocation2 + $0x50] sm:$0xff]  ;;  %v63_v8 = vrot.slane %v27_v2, 4  ;;  %v75_v11 = vrot.slane %v29_v3, 4  ;;  %vm159_vm4 = vcmask 1045509   ;;  %vm161_vm5 = vcmask 1046534  }
  0x11   :  { %v35_v9 = vld [vmem:[#allocation2 + $0x60] sm:$0xff]  ;;  %v37_v10 = vld [vmem:[#allocation2 + $0x70] sm:$0xff]  ;;  %v87_v12 = vrot.slane %v31_v4, 4  ;;  %v99_v13 = vrot.slane %v33_v5, 4  ;;  %v40_v14 = vmax.f32 %v23_v0, %v39_v6  ;;  %v52_v15 = vmax.f32 %v25_v1, %v51_v7  ;;  %v24_v46 = vld [vmem:[#allocation2 + $0x8] sm:$0xff]  ;;  %s242_s0 = smov [#allocation5]  }
  0x12   :  { %v64_v16 = vmax.f32 %v27_v2, %v63_v8  ;;  %v111_v17 = vrot.slane %v35_v9, 4  ;;  %v76_v18 = vmax.f32 %v29_v3, %v75_v11  ;;  %v123_v21 = vrot.slane %v37_v10, 4  ;;  %v26_v47 = vld [vmem:[#allocation2 + $0x18] sm:$0xff]  ;;  %v28_v52 = vld [vmem:[#allocation2 + $0x28] sm:$0xff]  ;;  %s182_s13 = sshll.u32 %s242_s0, 4  ;;  %s183_s13 = int_to_ptr.vmem [resolvable:$true] %s182_s13 }
  0x13   :  { %v88_v19 = vmax.f32 %v31_v4, %v87_v12  ;;  %v100_v20 = vmax.f32 %v33_v5, %v99_v13  ;;  %v41_v22 = vrot.slane %v40_v14, 2  ;;  %v53_v23 = vrot.slane %v52_v15, 2  ;;  %v30_v53 = vld [vmem:[#allocation2 + $0x38] sm:$0xff]  ;;  %v32_v58 = vld [vmem:[#allocation2 + $0x48] sm:$0xff]  ;;  %s215_s14 = scalar_lea.vmem %s183_s13, 256  ;;  %p220_p6 = scmp.lt.s32.totalorder %s183_s13, %s183_s13 }
  0x14   :  { %v65_v24 = vrot.slane %v64_v16, 2  ;;  %v112_v25 = vmax.f32 %v35_v9, %v111_v17  ;;  %v77_v26 = vrot.slane %v76_v18, 2  ;;  %v124_v29 = vmax.f32 %v37_v10, %v123_v21  ;;  %v34_v61 = vld [vmem:[#allocation2 + $0x58] sm:$0xff]  ;;  %v36_v13 = vld [vmem:[#allocation2 + $0x68] sm:$0xff]  ;;  %p216_p5 = scmp.ne.s32.totalorder %s183_s13, %s215_s14  ;;  %p221_p7 = scmp.lt.s32.totalorder %s215_s14, %s215_s14 }
  0x15   :  { %v89_v27 = vrot.slane %v88_v19, 2  ;;  %v101_v28 = vrot.slane %v100_v20, 2  ;;  %v42_v30 = vmax.f32 %v40_v14, %v41_v22  ;;  %v54_v31 = vmax.f32 %v52_v15, %v53_v23 }
  0x16   :  { %v66_v32 = vmax.f32 %v64_v16, %v65_v24  ;;  %v113_v33 = vrot.slane %v112_v25, 2  ;;  %v78_v34 = vmax.f32 %v76_v18, %v77_v26  ;;  %v125_v37 = vrot.slane %v124_v29, 2  ;;  %v38_v18 = vld [vmem:[#allocation2 + $0x78] sm:$0xff]  ;;  %p222_p8 = por %p221_p7, %p220_p6 }
  0x17   :  { %v90_v35 = vmax.f32 %v88_v19, %v89_v27  ;;  %v102_v36 = vmax.f32 %v100_v20, %v101_v28  ;;  %vm163_vm6 = vcmask 1047559   ;;  %v43_v38 = vrot.slane %v42_v30, 1 }
  0x18   :  { %v55_v39 = vrot.slane %v54_v31, 1  ;;  %v67_v40 = vrot.slane %v66_v32, 1  ;;  %v114_v41 = vmax.f32 %v112_v25, %v113_v33  ;;  %v79_v42 = vrot.slane %v78_v34, 1  ;;  %p223_p9 = pnand %p222_p8, %p216_p5 }
  0x19   :  { %v91_v43 = vrot.slane %v90_v35, 1  ;;  %v103_v44 = vrot.slane %v102_v36, 1  ;;  %v126_v45 = vmax.f32 %v124_v29, %v125_v37  ;;  %v44_v48 = vmax.f32 %v42_v30, %v43_v38 }
  0x1a   :  { %v56_v49 = vmax.f32 %v54_v31, %v55_v39  ;;  %v68_v50 = vmax.f32 %v66_v32, %v67_v40  ;;  %v115_v51 = vrot.slane %v114_v41, 1  ;;  %v80_v54 = vmax.f32 %v78_v34, %v79_v42 }
  0x1b   :  { %v92_v55 = vmax.f32 %v90_v35, %v91_v43  ;;  %v104_v56 = vmax.f32 %v102_v36, %v103_v44  ;;  %v127_v57 = vrot.slane %v126_v45, 1  ;;  %v45_v62 = vrot.slane %v24_v46, 4 }
  0x1c   :  { %v116_v59 = vmax.f32 %v114_v41, %v115_v51  ;;  %v152_v60 = vsel %vm151_vm0, %v56_v49, %v44_v48  ;;  %v57_v63 = vrot.slane %v26_v47, 4  ;;  %v69_v2 = vrot.slane %v28_v52, 4 }
  0x1d   :  { %v128_v0 = vmax.f32 %v126_v45, %v127_v57  ;;  %v154_v1 = vsel %vm153_vm1, %v68_v50, %v152_v60  ;;  %v81_v3 = vrot.slane %v30_v53, 4  ;;  %v46_v5 = vmax.f32 %v24_v46, %v45_v62 }
  0x1e   :  { %v156_v4 = vsel %vm155_vm2, %v80_v54, %v154_v1  ;;  %v58_v6 = vmax.f32 %v26_v47, %v57_v63  ;;  %v93_v7 = vrot.slane %v32_v58, 4  ;;  %v70_v9 = vmax.f32 %v28_v52, %v69_v2 }
  0x1f   :  { %v158_v8 = vsel %vm157_vm3, %v92_v55, %v156_v4  ;;  %v82_v10 = vmax.f32 %v30_v53, %v81_v3  ;;  %v105_v11 = vrot.slane %v34_v61, 4  ;;  %v47_v14 = vrot.slane %v46_v5, 2 }
  0x20   :  { %v160_v12 = vsel %vm159_vm4, %v104_v56, %v158_v8  ;;  %v59_v15 = vrot.slane %v58_v6, 2  ;;  %v94_v16 = vmax.f32 %v32_v58, %v93_v7  ;;  %v71_v19 = vrot.slane %v70_v9, 2 }
  0x21   :  { %v162_v17 = vsel %vm161_vm5, %v116_v59, %v160_v12  ;;  %v83_v20 = vrot.slane %v82_v10, 2  ;;  %v106_v21 = vmax.f32 %v34_v61, %v105_v11  ;;  %v48_v23 = vmax.f32 %v46_v5, %v47_v14 }
  0x22   :  { %v164_v22 = vsel %vm163_vm6, %v128_v0, %v162_v17  ;;  %v60_v24 = vmax.f32 %v58_v6, %v59_v15  ;;  %v95_v25 = vrot.slane %v94_v16, 2  ;;  %v72_v26 = vmax.f32 %v70_v9, %v71_v19 }
  0x23   :  { %174 = vst [vmem:[#allocation5] sm:$0xff] %v164_v22  ;;  %v84_v27 = vmax.f32 %v82_v10, %v83_v20  ;;  %v107_v28 = vrot.slane %v106_v21, 2  ;;  %v117_v29 = vrot.slane %v36_v13, 4  ;;  %v49_v30 = vrot.slane %v48_v23, 1 }
  0x24   :  { %v61_v31 = vrot.slane %v60_v24, 1  ;;  %v96_v32 = vmax.f32 %v94_v16, %v95_v25  ;;  %v129_v33 = vrot.slane %v38_v18, 4  ;;  %v73_v34 = vrot.slane %v72_v26, 1 }
  0x25   :  { %v85_v35 = vrot.slane %v84_v27, 1  ;;  %v108_v36 = vmax.f32 %v106_v21, %v107_v28  ;;  %v118_v37 = vmax.f32 %v36_v13, %v117_v29  ;;  %v50_v38 = vmax.f32 %v48_v23, %v49_v30 }
  0x26   :  { %v62_v39 = vmax.f32 %v60_v24, %v61_v31  ;;  %v97_v40 = vrot.slane %v96_v32, 1  ;;  %v130_v41 = vmax.f32 %v38_v18, %v129_v33  ;;  %v74_v42 = vmax.f32 %v72_v26, %v73_v34 }
  0x27   :  { %v86_v43 = vmax.f32 %v84_v27, %v85_v35  ;;  %v109_v44 = vrot.slane %v108_v36, 1  ;;  %v119_v45 = vrot.slane %v118_v37, 2 }
  0x28   :  { %v98_v46 = vmax.f32 %v96_v32, %v97_v40  ;;  %v131_v47 = vrot.slane %v130_v41, 2  ;;  %v165_v48 = vsel %vm151_vm0, %v62_v39, %v50_v38 }
  0x29   :  { %v110_v49 = vmax.f32 %v108_v36, %v109_v44  ;;  %v120_v50 = vmax.f32 %v118_v37, %v119_v45  ;;  %v166_v51 = vsel %vm153_vm1, %v74_v42, %v165_v48 }
  0x2a   :  { %v132_v52 = vmax.f32 %v130_v41, %v131_v47  ;;  %v167_v53 = vsel %vm155_vm2, %v86_v43, %v166_v51 }
  0x2b   :  { %v121_v54 = vrot.slane %v120_v50, 1  ;;  %v168_v55 = vsel %vm157_vm3, %v98_v46, %v167_v53 }
  0x2c   :  { %v133_v56 = vrot.slane %v132_v52, 1  ;;  %v169_v57 = vsel %vm159_vm4, %v110_v49, %v168_v55 }
  0x2d   :  { %v122_v58 = vmax.f32 %v120_v50, %v121_v54 }
  0x2e   :  { %v134_v59 = vmax.f32 %v132_v52, %v133_v56 }
  0x2f   :  { %v170_v60 = vsel %vm161_vm5, %v122_v58, %v169_v57 }
  0x30   :  { %v171_v61 = vsel %vm163_vm6, %v134_v59, %v170_v60 }
  0x31   :  { %175 = vst [vmem:[#allocation5 + $0x8] sm:$0xff] %v171_v61 }
  0x32   :  { %226 = shalt.err (!%p223_p9)
}
  0x33   :  { %185 = dma.vmem_to_hbm [thread:$0]  %s183_s13, 256, %s274_s1, [#allocation4]  }
  0x34   :  { %237 = dma.done.wait [#allocation4], 256  }
  0x35   :  { %238 = vsyncadd [#allocation4], 4294967040 }
  0x36   :  { %189 = vsyncpa [#allocation3], 1 }
  0x37   :  { %190 = vsyncpa [#allocation4], 1 }

</bundles_post_ra>
